<compile_context>
chip_gen: v6e
topology: v6e:2x2x1
jax: 0.10.0
libtpu: 0.0.40
codegen_flags: <defaults>
</compile_context>

<pallas_src>
import functools
import math

import jax
import jax.numpy as jnp
from jax.experimental import pallas as pl
from jax.experimental.pallas import tpu as pltpu


_PAD_LOGIT = -1.0e4  # finite sentinel: softplus(pad) == 0 exactly, no 0*inf NaN


def _round_up(n, m):
    return ((n + m - 1) // m) * m


def _stable_softplus(x):
    # softplus(x) = max(x, 0) + log1p(exp(-|x|))  (log1p matches torch closely)
    return jnp.maximum(x, 0.0) + jnp.log1p(jnp.exp(-jnp.abs(x)))


# ---------------------------------------------------------------------------
# Pallas kernel: weighted BCE-with-logits, mean reduction over all elements.
# ---------------------------------------------------------------------------
def _bce_loss_kernel(pred_ref, tgt_ref, pw_ref, out_ref, acc_ref, *, inv_denom):
    i = pl.program_id(1)

    @pl.when(i == 0)
    def _():
        acc_ref[...] = jnp.zeros_like(acc_ref)

    # All elementwise math in f32 (v5e has no bf16 VPU/EUP path).
    x = pred_ref[...].astype(jnp.float32)   # (tb, W) logits
    y = tgt_ref[...].astype(jnp.float32)    # (tb, W) targets in [0, 1]
    pw = pw_ref[...]                        # (1, W)  tiled pos_weight, broadcasts

    sp_pos = _stable_softplus(x)            # softplus(x)
    # pw*y*softplus(-x) + (1-y)*softplus(x)  ==  sp_pos*(1 - y + pw*y) - pw*y*x
    pwy = pw * y
    acc_ref[...] += sp_pos * (1.0 - y + pwy) - pwy * x

    # Epilogue only: XLU reduces + scale + store stay out of the steady state.
    @pl.when(i == pl.num_programs(1) - 1)
    def _():
        s = jnp.sum(acc_ref[...], axis=1, keepdims=True)   # (tb, 1) lane reduce
        s = jnp.sum(s, axis=0, keepdims=True)               # (1, 1)  sublane reduce
        out_ref[...] = jnp.reshape(s * inv_denom, (1, 1, 1))


def get_loss_multicls(pred, target, pos_weight, *, max_tile_rows=512,
                      vmem_budget_bytes=8 * 1024 * 1024):
    """BCEWithLogitsLoss(pos_weight=pos_weight)(pred, target), mean reduction.

    pred, target: (B, C);  pos_weight: (C,).  Returns a scalar float32 loss.
    """
    assert pred.ndim == 2 and pred.shape == target.shape
    B, C = pred.shape
    assert pos_weight.shape == (C,)

    # ---- lane-dense relayout: flatten row-major and re-block to width W -----
    W = math.lcm(C, 128)          # multiple of 128 lanes AND of C (keeps period)
    total = B * C
    rows = -(-total // W)

    # Sublane multiple: 8 for f32, 16 for bf16/f16, 32 for 8-bit types.
    min_itemsize = min(pred.dtype.itemsize, target.dtype.itemsize, 4)
    sub = max(8, 32 // min_itemsize)

    # Row tile: as big as the VMEM budget allows (2 inputs x 2 pipeline buffers
    # + f32 accumulator), capped, rounded to the sublane multiple.  The budget
    # keeps the footprint comfortably under v5e's 16 MiB / v7x's 32 MiB scoped
    # VMEM defaults.
    bytes_per_row = W * (pred.dtype.itemsize + target.dtype.itemsize) * 2 + W * 4
    tb_cap = max(sub, (vmem_budget_bytes // bytes_per_row) // sub * sub)
    tb_cap = min(tb_cap, max(sub, (max_tile_rows // sub) * sub))
    tb = min(tb_cap, _round_up(rows, sub))

    # Grid: (parallel cores, reduction steps).  P=2 lets v7x's two TensorCores
    # split the stream; it is a harmless sequential loop on v5e/v6e.
    nblocks = -(-rows // tb)
    P = 2 if nblocks >= 2 else 1
    steps = -(-nblocks // P)
    rows_pad = P * steps * tb

    # Sentinel padding: logits -> -1e4, targets -> 0  =>  exact 0 contribution.
    pred_flat = pred.reshape(-1)
    tgt_flat = target.reshape(-1)
    pad_amt = rows_pad * W - total
    if pad_amt:
        pred_flat = jnp.pad(pred_flat, (0, pad_amt), constant_values=_PAD_LOGIT)
        tgt_flat = jnp.pad(tgt_flat, (0, pad_amt), constant_values=0)
    pred2d = pred_flat.reshape(rows_pad, W)
    tgt2d = tgt_flat.reshape(rows_pad, W)

    # pos_weight tiled to one lane-dense row; stays VMEM-resident (constant
    # block index) across the whole grid.
    pw_row = jnp.tile(pos_weight.astype(jnp.float32), W // C).reshape(1, W)

    kernel = functools.partial(_bce_loss_kernel, inv_denom=1.0 / float(total))

    cost = pl.CostEstimate(
        flops=12 * total,                  # mul/add/max per element
        transcendentals=2 * total,         # exp + log1p per element
        bytes_accessed=int(pred.size * pred.dtype.itemsize
                           + target.size * target.dtype.itemsize
                           + W * 4 + P * 4))

    out = pl.pallas_call(
        kernel,
        out_shape=jax.ShapeDtypeStruct((P, 1, 1), jnp.float32),
        grid_spec=pltpu.PrefetchScalarGridSpec(
            num_scalar_prefetch=0,
            grid=(P, steps),
            in_specs=[
                pl.BlockSpec((tb, W), lambda p, i: (p * steps + i, 0)),  # pred
                pl.BlockSpec((tb, W), lambda p, i: (p * steps + i, 0)),  # target
                pl.BlockSpec((1, W), lambda p, i: (0, 0)),               # pos_weight
            ],
            out_specs=pl.BlockSpec((1, 1, 1), lambda p, i: (p, 0, 0)),
            scratch_shapes=[pltpu.VMEM((tb, W), jnp.float32)],
        ),
        compiler_params=pltpu.CompilerParams(
            dimension_semantics=("parallel", "arbitrary"),
        ),
        cost_estimate=cost,
    )(pred2d, tgt2d, pw_row)

    # Each per-core partial is already scaled by 1/(B*C); sum the P partials.
    return jnp.sum(out)


class GetLossMultiCls:
    """Mirror of get_loss_MultiCls: pos_weight = 1 / (class_counts + 1e-6)."""

    def __init__(self, class_counts):
        self.pos_weight = 1.0 / (jnp.asarray(class_counts, jnp.float32) + 1e-6)

    def __call__(self, pred, target):
        return get_loss_multicls(pred, target, self.pos_weight)


# ---------------------------------------------------------------------------
# Pure-JAX reference (same math as PyTorch's BCEWithLogitsLoss w/ pos_weight).
# ---------------------------------------------------------------------------
def _reference_loss(pred, target, pos_weight):
    x = pred.astype(jnp.float32)
    y = target.astype(jnp.float32)
    sp_pos = _stable_softplus(x)
    sp_neg = sp_pos - x
    elem = pos_weight[None, :] * y * sp_neg + (1.0 - y) * sp_pos
    return jnp.mean(elem)


def _check(loss, ref, tol=1e-5):
    assert loss.shape == (), loss.shape
    assert bool(jnp.abs(loss - ref) <= tol * (1.0 + jnp.abs(ref))), (loss, ref)


if __name__ == "__main__":
    key = jax.random.PRNGKey(0)
    k_cnt, k1, k2, k3, k4, k5, k6 = jax.random.split(key, 7)

    num_class = 10
    class_counts = jax.random.uniform(k_cnt, (num_class,), jnp.float32,
                                      minval=0.05, maxval=1.0)
    loss_mod = GetLossMultiCls(class_counts)

    # 1) Small batch: single grid step, heavy tail padding inside one row block.
    B = 16
    pred = jax.random.normal(k1, (B, num_class), jnp.float32)
    target = (jax.random.uniform(k2, (B, num_class)) < 0.3).astype(jnp.float32)
    loss = jax.block_until_ready(loss_mod(pred, target))
    _check(loss, _reference_loss(pred, target, loss_mod.pos_weight))

    # 2) Batch not a multiple of the lane-dense row width: exercises sentinel pad.
    B2 = 300
    pred2 = jax.random.normal(k3, (B2, num_class), jnp.float32)
    target2 = (jax.random.uniform(k4, (B2, num_class)) < 0.3).astype(jnp.float32)
    loss2 = jax.block_until_ready(loss_mod(pred2, target2))
    _check(loss2, _reference_loss(pred2, target2, loss_mod.pos_weight))

    # 3) Multi-block: forces the 2-way parallel axis + multi-step reduction.
    B3 = 2048
    pred3 = jax.random.normal(k5, (B3, num_class), jnp.float32)
    target3 = (jax.random.uniform(k6, (B3, num_class)) < 0.3).astype(jnp.float32)
    loss3 = jax.block_until_ready(
        get_loss_multicls(pred3, target3, loss_mod.pos_weight, max_tile_rows=8))
    _check(loss3, _reference_loss(pred3, target3, loss_mod.pos_weight), tol=1e-4)

    # 4) bf16 inputs fed straight through (halves HBM bytes); f32 math in-kernel.
    pred4 = pred2.astype(jnp.bfloat16)
    target4 = target2.astype(jnp.bfloat16)
    loss4 = jax.block_until_ready(loss_mod(pred4, target4))
    _check(loss4, _reference_loss(pred4, target4, loss_mod.pos_weight), tol=1e-4)

    print("KERNEL_OK")
</pallas_src>

<mosaic_0001>
module attributes {stable_mosaic.version = 11 : i64} {
  func.func @_bce_loss_kernel(%arg0: i32, %arg1: i32, %arg2: memref<8x640xf32, #tpu.memory_space<vmem>>, %arg3: memref<8x640xf32, #tpu.memory_space<vmem>>, %arg4: memref<1x640xf32, #tpu.memory_space<vmem>>, %arg5: memref<1x1x1xf32, #tpu.memory_space<vmem>>, %arg6: memref<8x640xf32, #tpu.memory_space<vmem>>) attributes {dimension_semantics = [#tpu.dimension_semantics<parallel>, #tpu.dimension_semantics<arbitrary>], iteration_bounds = array<i64: 1, 1>, scalar_prefetch = 0 : i64, scratch_operands = 1 : i64, tpu.core_type = #tpu.core_type<tc>, window_params = [{transform_indices = @transform_0, window_bounds = array<i64: 8, 640>}, {transform_indices = @transform_1, window_bounds = array<i64: 8, 640>}, {pipeline_mode = #tpu.pipeline_mode<synchronous>, transform_indices = @transform_2, window_bounds = array<i64: 1, 640>}, {transform_indices = @transform_3, window_bounds = array<i64: 1, 1, 1>}]} {
    %c0_i32 = arith.constant 0 : i32
    %0 = arith.cmpi eq, %arg1, %c0_i32 : i32
    %1 = arith.extui %0 : i1 to i32
    %c0_i32_0 = arith.constant 0 : i32
    %2 = arith.cmpi ne, %1, %c0_i32_0 : i32
    scf.if %2 {
      %cst_14 = arith.constant 0.000000e+00 : f32
      %28 = vector.broadcast %cst_14 : f32 to vector<8x640xf32>
      %c0_15 = arith.constant 0 : index
      %c0_16 = arith.constant 0 : index
      %29 = vector.load %arg6[%c0_15, %c0_16] : memref<8x640xf32, #tpu.memory_space<vmem>>, vector<8x640xf32>
      tpu.vector_store %arg6[%c0_15, %c0_16], %28 {strides = array<i32>} : memref<8x640xf32, #tpu.memory_space<vmem>>, vector<8x640xf32>,
    } else {
    }
    %c0 = arith.constant 0 : index
    %c0_1 = arith.constant 0 : index
    %3 = vector.load %arg2[%c0, %c0_1] : memref<8x640xf32, #tpu.memory_space<vmem>>, vector<8x640xf32>
    %c0_2 = arith.constant 0 : index
    %c0_3 = arith.constant 0 : index
    %4 = vector.load %arg3[%c0_2, %c0_3] : memref<8x640xf32, #tpu.memory_space<vmem>>, vector<8x640xf32>
    %c0_4 = arith.constant 0 : index
    %c0_5 = arith.constant 0 : index
    %5 = vector.load %arg4[%c0_4, %c0_5] : memref<1x640xf32, #tpu.memory_space<vmem>>, vector<1x640xf32>
    %cst = arith.constant 0.000000e+00 : f32
    %6 = vector.broadcast %cst : f32 to vector<8x640xf32>
    %7 = arith.maximumf %3, %6 : vector<8x640xf32>
    %8 = math.absf %3 : vector<8x640xf32>
    %cst_6 = arith.constant 0.000000e+00 : f32
    %9 = vector.broadcast %cst_6 : f32 to vector<8x640xf32>
    %10 = arith.subf %9, %8 : vector<8x640xf32>
    %11 = math.exp %10 : vector<8x640xf32>
    %12 = math.log1p %11 : vector<8x640xf32>
    %13 = arith.addf %7, %12 : vector<8x640xf32>
    %14 = vector.broadcast %5 : vector<1x640xf32> to vector<8x640xf32>
    %15 = arith.mulf %14, %4 : vector<8x640xf32>
    %c0_7 = arith.constant 0 : index
    %c0_8 = arith.constant 0 : index
    %16 = vector.load %arg6[%c0_7, %c0_8] : memref<8x640xf32, #tpu.memory_space<vmem>>, vector<8x640xf32>
    %cst_9 = arith.constant 1.000000e+00 : f32
    %17 = vector.broadcast %cst_9 : f32 to vector<8x640xf32>
    %18 = arith.subf %17, %4 : vector<8x640xf32>
    %19 = arith.addf %18, %15 : vector<8x640xf32>
    %20 = arith.mulf %13, %19 : vector<8x640xf32>
    %21 = arith.mulf %15, %3 : vector<8x640xf32>
    %22 = arith.subf %20, %21 : vector<8x640xf32>
    %23 = arith.addf %16, %22 : vector<8x640xf32>
    %c0_10 = arith.constant 0 : index
    %c0_11 = arith.constant 0 : index
    %24 = vector.load %arg6[%c0_10, %c0_11] : memref<8x640xf32, #tpu.memory_space<vmem>>, vector<8x640xf32>
    tpu.vector_store %arg6[%c0_10, %c0_11], %23 {strides = array<i32>} : memref<8x640xf32, #tpu.memory_space<vmem>>, vector<8x640xf32>,
    %c0_i32_12 = arith.constant 0 : i32
    %25 = arith.cmpi eq, %arg1, %c0_i32_12 : i32
    %26 = arith.extui %25 : i1 to i32
    %c0_i32_13 = arith.constant 0 : i32
    %27 = arith.cmpi ne, %26, %c0_i32_13 : i32
    scf.if %27 {
      %c0_14 = arith.constant 0 : index
      %c0_15 = arith.constant 0 : index
      %28 = vector.load %arg6[%c0_14, %c0_15] : memref<8x640xf32, #tpu.memory_space<vmem>>, vector<8x640xf32>
      %cst_16 = arith.constant dense<0.000000e+00> : vector<8xf32>
      %29 = vector.multi_reduction <add>, %28, %cst_16 [1] : vector<8x640xf32> to vector<8xf32>
      %30 = vector.shape_cast %29 : vector<8xf32> to vector<8x1xf32>
      %cst_17 = arith.constant dense<0.000000e+00> : vector<1xf32>
      %31 = vector.multi_reduction <add>, %30, %cst_17 [0] : vector<8x1xf32> to vector<1xf32>
      %32 = vector.shape_cast %31 : vector<1xf32> to vector<1x1xf32>
      %cst_18 = arith.constant 6.250000e-03 : f32
      %33 = vector.broadcast %cst_18 : f32 to vector<1x1xf32>
      %34 = arith.mulf %32, %33 : vector<1x1xf32>
      %35 = vector.shape_cast %34 : vector<1x1xf32> to vector<1x1x1xf32>
      %c0_19 = arith.constant 0 : index
      %c0_20 = arith.constant 0 : index
      %c0_21 = arith.constant 0 : index
      %36 = vector.load %arg5[%c0_19, %c0_20, %c0_21] : memref<1x1x1xf32, #tpu.memory_space<vmem>>, vector<1x1x1xf32>
      tpu.vector_store %arg5[%c0_19, %c0_20, %c0_21], %35 {strides = array<i32>} : memref<1x1x1xf32, #tpu.memory_space<vmem>>, vector<1x1x1xf32>,
    } else {
    }
    return
  }
  func.func @transform_0(%arg0: i32, %arg1: i32) -> (i32, i32) {
    %c1_i32 = arith.constant 1 : i32
    %0 = arith.muli %arg0, %c1_i32 : i32
    %1 = arith.addi %0, %arg1 : i32
    %c0_i32 = arith.constant 0 : i32
    %c0_i32_0 = arith.constant 0 : i32
    return %1, %c0_i32 : i32, i32
  }
  func.func @transform_1(%arg0: i32, %arg1: i32) -> (i32, i32) {
    %c1_i32 = arith.constant 1 : i32
    %0 = arith.muli %arg0, %c1_i32 : i32
    %1 = arith.addi %0, %arg1 : i32
    %c0_i32 = arith.constant 0 : i32
    %c0_i32_0 = arith.constant 0 : i32
    return %1, %c0_i32 : i32, i32
  }
  func.func @transform_2(%arg0: i32, %arg1: i32) -> (i32, i32) {
    %c0_i32 = arith.constant 0 : i32
    %c0_i32_0 = arith.constant 0 : i32
    %c0_i32_1 = arith.constant 0 : i32
    return %c0_i32, %c0_i32_0 : i32, i32
  }
  func.func @transform_3(%arg0: i32, %arg1: i32) -> (i32, i32, i32) {
    %c0_i32 = arith.constant 0 : i32
    %c0_i32_0 = arith.constant 0 : i32
    %c0_i32_1 = arith.constant 0 : i32
    return %arg0, %c0_i32, %c0_i32_0 : i32, i32, i32
  }
}

</mosaic_0001>

<bundles_post_ra>
// kernel: tpu_custom_call.1
= control target key start
LH: loop header
LB: loop body
LE: loop exit
PB: predicated region body
PF: predicated region fallthrough
CT: control target
= control target key end

     0   :  { %8 = vsyncpa [#allocation4], 0  ;;  %s492_s0 = inlined_call_operand.hbm [shape: f32[8,640], index: 0, kind: input, shape index: {}]   ;;  %s493_s1 = inlined_call_operand.hbm [shape: f32[8,640], index: 1, kind: input, shape index: {}]   ;;  %s494_s2 = inlined_call_operand.hbm [shape: f32[1,640], index: 2, kind: input, shape index: {}]   ;;  %s495_s3 = inlined_call_operand.hbm [shape: f32[1,1,1], index: 3, kind: output, shape index: {}]  }
   0x1   :  { %9 = vsyncpa [#allocation7], 0 }
   0x2   :  { %10 = vsyncpa [#allocation5], 0  ;;  %s375_s12 = smov [#allocation6]   ;;  %s376_s14 = smov [#allocation3]  }
   0x3   :  { %s35_s13 = sshll.u32 %s375_s12, 4  ;;  %s21_s15 = sshll.u32 %s376_s14, 4  ;;  %s36_s13 = int_to_ptr.vmem [resolvable:$true] %s35_s13  ;;  %s22_s15 = int_to_ptr.vmem [resolvable:$true] %s21_s15 }
   0x4   :  { %s297_s16 = scalar_lea.vmem %s36_s13, 640  ;;  %p302_p1 = scmp.lt.s32.totalorder %s36_s13, %s36_s13 }
   0x5   :  { %p298_p0 = scmp.ne.s32.totalorder %s36_s13, %s297_s16  ;;  %p303_p2 = scmp.lt.s32.totalorder %s297_s16, %s297_s16 }
   0x7   :  { %p304_p3 = por %p303_p2, %p302_p1 }
   0x9   :  { %p305_p4 = pnand %p304_p3, %p298_p0 }
   0xb   :  { %308 = shalt.err (!%p305_p4)
}
   0xc   :  { %38 = dma.hbm_to_vmem [thread:$0]  %s493_s1, 640, %s36_s13, [#allocation7]  }
   0xd   :  { %s317_s19 = scalar_lea.vmem %s22_s15, 640  ;;  %p322_p6 = scmp.lt.s32.totalorder %s22_s15, %s22_s15 }
   0xe   :  { %p318_p5 = scmp.ne.s32.totalorder %s22_s15, %s317_s19  ;;  %p323_p7 = scmp.lt.s32.totalorder %s317_s19, %s317_s19 }
  0x10   :  { %p324_p8 = por %p323_p7, %p322_p6 }
  0x12   :  { %p325_p9 = pnand %p324_p8, %p318_p5 }
  0x14   :  { %328 = shalt.err (!%p325_p9)
}
  0x15   :  { %24 = dma.hbm_to_vmem [thread:$0]  %s492_s0, 640, %s22_s15, [#allocation4]  }
  0x16   :  { %s377_s22 = smov [#allocation8]  }
  0x17   :  { %s45_s23 = sshll.u32 %s377_s22, 4  ;;  %s46_s23 = int_to_ptr.vmem [resolvable:$true] %s45_s23 }
  0x18   :  { %s337_s24 = scalar_lea.vmem %s46_s23, 80  ;;  %s341_s25 = scalar_lea.vmem %s46_s23, 96 }
  0x19   :  { %p338_p10 = scmp.ne.s32.totalorder %s46_s23, %s337_s24  ;;  %p342_p11 = scmp.lt.s32.totalorder %s46_s23, %s46_s23 }
  0x1a   :  { %p343_p12 = scmp.lt.s32.totalorder %s341_s25, %s337_s24 }
  0x1c   :  { %p344_p13 = por %p343_p12, %p342_p11 }
  0x1e   :  { %p345_p0 = pnand %p344_p13, %p338_p10 }
  0x20   :  { %348 = shalt.err (!%p345_p0)
}
  0x21   :  { %48 = dma.hbm_to_vmem [thread:$0]  %s494_s2, 80, %s46_s23, [#allocation7]  }
  0x22   :  { %369 = dma.done.wait [#allocation4], 640  }
  0x23   :  { %370 = vsyncadd [#allocation4], 4294966656 }
  0x24   :  { %371 = dma.done.wait [#allocation7], 720  }
  0x25   :  { %372 = vsyncadd [#allocation7], 4294966576  ;;  %v408_v0 = vld [vmem:[#allocation3] sm:$0xff]  ;;  %v410_v1 = vld [vmem:[#allocation3 + $0x8] sm:$0xff]  ;;  %v156_v20 = vlaneseq  ;;  %s378_s0 = smov [#allocation9]   ;;  %vm247_vm5 = vcmask 0  }
  0x26   :  { %v412_v2 = vld [vmem:[#allocation3 + $0x10] sm:$0xff]  ;;  %v414_v3 = vld [vmem:[#allocation3 + $0x18] sm:$0xff]  ;;  %v416_v4 = vld [vmem:[#allocation3 + $0x20] sm:$0xff]  ;;  %v85_v5 = vand.u32 2147483647, %v408_v0  ;;  %v80_v36 = vmax.f32 %v408_v0, 0.0 }
  0x27   :  { %v86_v6 = vand.u32 2147483647, %v410_v1  ;;  %v87_v7 = vand.u32 2147483647, %v412_v2  ;;  %v88_v8 = vand.u32 2147483647, %v414_v3 }
  0x28   :  { %v89_v9 = vand.u32 2147483647, %v416_v4  ;;  %v90_v10 = vsub.f32 0.0, %v85_v5  ;;  %v157_v21 = vshrl.u32 %v156_v20, 7  ;;  %v79_v29 = vld [vmem:[#allocation8] sm:$0x1f] }
  0x29   :  { %v91_v11 = vsub.f32 0.0, %v86_v6  ;;  %v92_v12 = vsub.f32 0.0, %v87_v7  ;;  %v93_v13 = vsub.f32 0.0, %v88_v8  ;;  %v74_v39 = vld [vmem:[#allocation6] sm:$0xff]  ;;  %v75_v40 = vld [vmem:[#allocation6 + $0x8] sm:$0xff]  ;;  %v81_v44 = vmax.f32 %v410_v1, 0.0 }
  0x2a   :  { %v94_v14 = vsub.f32 0.0, %v89_v9  ;;  %v95_v15 = vmul.f32 1.442695, %v90_v10  ;;  %v158_v27 = vsub.s32 0, %v157_v21  ;;  %v162_v31 = vsub.s32 1, %v157_v21  ;;  %v76_v48 = vld [vmem:[#allocation6 + $0x10] sm:$0xff] }
  0x2b   :  { %v97_v16 = vmul.f32 1.442695, %v91_v11  ;;  %v99_v17 = vmul.f32 1.442695, %v92_v12  ;;  %v101_v18 = vmul.f32 1.442695, %v93_v13 }
  0x2c   :  { %269 = vpow2.f32 %v95_v15  ;;  %v103_v19 = vmul.f32 1.442695, %v94_v14  ;;  %v166_v33 = vsub.s32 2, %v157_v21  ;;  %v170_v35 = vsub.s32 3, %v157_v21  ;;  %v77_v52 = vld [vmem:[#allocation6 + $0x18] sm:$0xff]  ;;  %v78_v57 = vld [vmem:[#allocation6 + $0x20] sm:$0xff] }
  0x2d   :  { %271 = vpow2.f32 %v97_v16  ;;  %v159_v37 = vrot.slane %v79_v29, %v158_v27  ;;  %v174_v38 = vsub.s32 4, %v157_v21  ;;  %v163_v43 = vrot.slane %v79_v29, %v162_v31  ;;  %s255_s2 = sshll.u32 %s378_s0, 4  ;;  %s256_s2 = int_to_ptr.vmem [resolvable:$true] %s255_s2 }
  0x2e   :  { %273 = vpow2.f32 %v99_v17  ;;  %v82_v45 = vmax.f32 %v412_v2, 0.0  ;;  %v167_v47 = vrot.slane %v79_v29, %v166_v33  ;;  %v83_v49 = vmax.f32 %v414_v3, 0.0  ;;  %s349_s27 = scalar_lea.vmem %s256_s2, 16  ;;  %s353_s28 = scalar_lea.vmem %s256_s2, 32 }
  0x2f   :  { %275 = vpow2.f32 %v101_v18  ;;  %v171_v51 = vrot.slane %v79_v29, %v170_v35  ;;  %v84_v53 = vmax.f32 %v416_v4, 0.0  ;;  %v175_v54 = vrot.slane %v79_v29, %v174_v38  ;;  %p350_p1 = scmp.ne.s32.totalorder %s256_s2, %s349_s27  ;;  %p354_p2 = scmp.lt.s32.totalorder %s256_s2, %s256_s2 }
  0x30   :  { %277 = vpow2.f32 %v103_v19  ;;  %v191_v55 = vsub.f32 1.0, %v74_v39  ;;  %v192_v56 = vsub.f32 1.0, %v75_v40  ;;  %v181_v60 = vmul.f32 %v159_v37, %v74_v39  ;;  %p355_p3 = scmp.lt.s32.totalorder %s353_s28, %s349_s27 }
  0x31   :  { %v182_v61 = vmul.f32 %v163_v43, %v75_v40  ;;  %v183_v5 = vmul.f32 %v167_v47, %v76_v48  ;;  %v193_v6 = vsub.f32 1.0, %v76_v48  ;;  %v184_v10 = vmul.f32 %v171_v51, %v77_v52 }
  0x32   :  { %v185_v12 = vmul.f32 %v175_v54, %v78_v57  ;;  %v194_v13 = vsub.f32 1.0, %v77_v52  ;;  %v195_v14 = vsub.f32 1.0, %v78_v57  ;;  %v196_v17 = vadd.f32 %v191_v55, %v181_v60  ;;  %p356_p4 = por %p355_p3, %p354_p2 }
  0x33   :  { %v197_v18 = vadd.f32 %v192_v56, %v182_v61  ;;  %v207_v47 = vmul.f32 %v182_v61, %v410_v1  ;;  %v208_v56 = vmul.f32 %v183_v5, %v412_v2 }
  0x34   :  { %v199_v37 = vadd.f32 %v194_v13, %v184_v10  ;;  %v200_v1 = vadd.f32 %v195_v14, %v185_v12  ;;  %v210_v2 = vmul.f32 %v185_v12, %v416_v4  ;;  %p357_p5 = pnand %p356_p4, %p350_p1 }
  0x39   :  { %v270_v22 = vpop.eup %269 }
  0x3a   :  { %v423_v23 = vpop.eup %271  ;;  %v105_v24 = vadd.f32 1.0, %v270_v22  ;;  %v108_v41 = vmul.f32 -0.5, %v270_v22  ;;  %v111_v62 = vand.u32 2147483647, %v270_v22 }
  0x3b   :  { %v425_v25 = vpop.eup %273  ;;  %v114_v26 = vadd.f32 1.0, %v423_v23  ;;  %v117_v46 = vmul.f32 -0.5, %v423_v23  ;;  %v120_v7 = vand.u32 2147483647, %v423_v23 }
  0x3c   :  { %v428_v28 = vpop.eup %275  ;;  %279 = vlog2.f32 %v105_v24  ;;  %v123_v30 = vadd.f32 1.0, %v425_v25  ;;  %v126_v50 = vmul.f32 -0.5, %v425_v25  ;;  %v109_v58 = vadd.f32 1.0, %v108_v41 }
  0x3d   :  { %v431_v32 = vpop.eup %277  ;;  %281 = vlog2.f32 %v114_v26  ;;  %v132_v34 = vadd.f32 1.0, %v428_v28  ;;  %v135_v59 = vmul.f32 -0.5, %v428_v28  ;;  %v118_v63 = vadd.f32 1.0, %v117_v46 }
  0x3e   :  { %283 = vlog2.f32 %v123_v30  ;;  %v141_v42 = vadd.f32 1.0, %v431_v32  ;;  %v127_v8 = vadd.f32 1.0, %v126_v50  ;;  %v144_v9 = vmul.f32 -0.5, %v431_v32 }
  0x3f   :  { %285 = vlog2.f32 %v132_v34  ;;  %v129_v11 = vand.u32 2147483647, %v425_v25  ;;  %v110_v15 = vmul.f32 %v270_v22, %v109_v58  ;;  %v136_v16 = vadd.f32 1.0, %v135_v59 }
  0x40   :  { %287 = vlog2.f32 %v141_v42  ;;  %vm446_vm0 = vcmp.lt.f32.partialorder %v111_v62, 0.0004427343  ;;  %v119_v21 = vmul.f32 %v423_v23, %v118_v63  ;;  %v138_v24 = vand.u32 2147483647, %v428_v28 }
  0x41   :  { %v198_v26 = vadd.f32 %v193_v6, %v183_v5  ;;  %vm452_vm1 = vcmp.lt.f32.partialorder %v120_v7, 0.0004427343  ;;  %v128_v22 = vmul.f32 %v425_v25, %v127_v8  ;;  %v145_v31 = vadd.f32 1.0, %v144_v9 }
  0x42   :  { %vm457_vm2 = vcmp.lt.f32.partialorder %v129_v11, 0.0004427343  ;;  %v147_v23 = vand.u32 2147483647, %v431_v32  ;;  %v137_v40 = vmul.f32 %v428_v28, %v136_v16  ;;  %v206_v41 = vmul.f32 %v181_v60, %v408_v0 }
  0x43   :  { %vm468_vm3 = vcmp.lt.f32.partialorder %v138_v24, 0.0004427343  ;;  %v146_v28 = vmul.f32 %v431_v32, %v145_v31  ;;  %v209_v32 = vmul.f32 %v184_v10, %v414_v3 }
  0x44   :  { %vm148_vm4 = vcmp.lt.f32.partialorder %v147_v23, 0.0004427343 }
  0x49   :  { %v280_v19 = vpop.eup %279 }
  0x4a   :  { %v282_v27 = vpop.eup %281  ;;  %v107_v29 = vmul.f32 0.6931472, %v280_v19 }
  0x4b   :  { %v284_v33 = vpop.eup %283  ;;  %v116_v34 = vmul.f32 0.6931472, %v282_v27 }
  0x4c   :  { %v113_v38 = vsel %vm446_vm0, %v110_v15, %v107_v29  ;;  %v125_v39 = vmul.f32 0.6931472, %v284_v33  ;;  %v286_v42 = vpop.eup %285 }
  0x4d   :  { %v122_v25 = vsel %vm452_vm1, %v119_v21, %v116_v34  ;;  %v150_v46 = vadd.f32 %v113_v38, %v80_v36  ;;  %v134_v50 = vmul.f32 0.6931472, %v286_v42  ;;  %v288_v52 = vpop.eup %287 }
  0x4e   :  { %v131_v48 = vsel %vm457_vm2, %v128_v22, %v125_v39  ;;  %v151_v51 = vadd.f32 %v122_v25, %v81_v44  ;;  %v143_v36 = vmul.f32 0.6931472, %v288_v52 }
  0x4f   :  { %v152_v54 = vadd.f32 %v131_v48, %v82_v45  ;;  %v201_v55 = vmul.f32 %v196_v17, %v150_v46  ;;  %v140_v0 = vsel %vm468_vm3, %v137_v40, %v134_v50 }
  0x50   :  { %v202_v57 = vmul.f32 %v197_v18, %v151_v51  ;;  %v153_v58 = vadd.f32 %v140_v0, %v83_v49  ;;  %v149_v60 = vsel %vm148_vm4, %v146_v28, %v143_v36 }
  0x51   :  { %v203_v59 = vmul.f32 %v198_v26, %v152_v54  ;;  %v211_v44 = vsub.f32 %v201_v55, %v206_v41  ;;  %v154_v45 = vadd.f32 %v149_v60, %v84_v53 }
  0x52   :  { %v212_v61 = vsub.f32 %v202_v57, %v207_v47  ;;  %v204_v62 = vmul.f32 %v199_v37, %v153_v58 }
  0x53   :  { %v213_v63 = vsub.f32 %v203_v59, %v208_v56  ;;  %v205_v6 = vmul.f32 %v200_v1, %v154_v45 }
  0x54   :  { %v234_v5 = vadd.f32 %v212_v61, %v211_v44  ;;  %v214_v7 = vsub.f32 %v204_v62, %v209_v32 }
  0x55   :  { %v215_v9 = vsub.f32 %v205_v6, %v210_v2 }
  0x56   :  { %v235_v8 = vadd.f32 %v234_v5, %v213_v63 }
  0x58   :  { %v236_v11 = vadd.f32 %v235_v8, %v214_v7 }
  0x5a   :  { %v237_v49 = vadd.f32 %v236_v11, %v215_v9 }
  0x5c   :  { %238 = vadd.xlane.f32.xlu0 %v237_v49 }
  0xe5   :  { %v239_v13 = vpop.xlane.xlu0 %238 }
  0xe6   :  { %v240_v3 = vrot.slane %v239_v13, 4 }
  0xe8   :  { %v241_v10 = vadd.f32 %v240_v3, %v239_v13 }
  0xea   :  { %v242_v14 = vrot.slane %v241_v10, 2 }
  0xec   :  { %v243_v15 = vadd.f32 %v242_v14, %v241_v10 }
  0xee   :  { %v244_v16 = vrot.slane %v243_v15, 1 }
  0xf0   :  { %v245_v53 = vadd.f32 %v244_v16, %v243_v15 }
  0xf2   :  { %v246_v4 = vmul.f32 0.00625, %v245_v53 }
  0xf4   :  { %248 = vst.msk [vmem:[#allocation9] sm:$0x1] %vm247_vm5, %v246_v4 }
  0xf5   :  { %360 = shalt.err (!%p357_p5)
}
  0xf6   :  { %258 = dma.vmem_to_hbm [thread:$0]  %s256_s2, 16, %s495_s3, [#allocation5]  }
  0xf7   :  { %373 = dma.done.wait [#allocation5], 16  }
  0xf8   :  { %374 = vsyncadd [#allocation5], 4294967280 }
  0xf9   :  { %262 = vsyncpa [#allocation4], 1 }
  0xfa   :  { %263 = vsyncpa [#allocation7], 1 }
  0xfb   :  { %264 = vsyncpa [#allocation5], 1 }

</bundles_post_ra>
